<compile_context>
chip_gen: v6e
topology: v6e:2x2x1
jax: 0.10.0
libtpu: 0.0.40
codegen_flags: <defaults>
</compile_context>

<pallas_src>
import functools

import numpy as np
import jax
import jax.numpy as jnp
from jax.experimental import pallas as pl
from jax.experimental.pallas import tpu as pltpu
from scipy.optimize import linear_sum_assignment


def _round_up(x, m):
    return ((x + m - 1) // m) * m


# ----------------------------- Pallas kernel --------------------------------


def _cost_kernel(q_ref, t_ref, c_ref, *, w_class, w_span, w_giou):
    """One (TM, TN) block of the matching-cost matrix.

    q_ref : (TM, 8)  packed per-query features  [cx, w, st, ed, prob_fg, 0, 0, 0]
    t_ref : (8, TN)  packed per-target features (rows: cx, w, st, ed, 0, 0, 0, 0)
    c_ref : (TM, TN) output cost block
    """
    q = q_ref[...]
    o_cx, o_w = q[:, 0:1], q[:, 1:2]
    o_st, o_ed = q[:, 2:3], q[:, 3:4]
    prob_fg = q[:, 4:5]

    t_cx = t_ref[0:1, :]
    t_w = t_ref[1:2, :]
    t_st = t_ref[2:3, :]
    t_ed = t_ref[3:4, :]

    # --- L1 cdist on (cx, w) -------------------------------------------------
    cost_span = jnp.abs(o_cx - t_cx) + jnp.abs(o_w - t_w)        # (TM, TN)

    # --- generalized temporal IoU on (st, ed) --------------------------------
    inter_raw = jnp.minimum(o_ed, t_ed) - jnp.maximum(o_st, t_st)
    inter = jnp.maximum(inter_raw, 0.0)
    union = o_w + t_w - inter
    # enclosure: max(ed) - min(st) == inter_raw + |ed1 - ed2| + |st1 - st2|
    enc = inter_raw + jnp.abs(o_ed - t_ed) + jnp.abs(o_st - t_st)

    inv_union = pl.reciprocal(union, approx=True)   # EUP slot (VALU is binding)
    inv_enc = pl.reciprocal(enc, approx=True)
    # giou = iou - (enc - union)/enc  ==  inter/union + union/enc - 1
    giou = inter * inv_union + union * inv_enc - 1.0

    c_ref[...] = (w_span * cost_span - w_giou * giou
                  - w_class * prob_fg).astype(c_ref.dtype)


def pallas_matching_cost(pred_logits, pred_spans, tgt_spans,
                         cost_class=1.0, cost_span=1.0, cost_giou=1.0,
                         foreground_label=0):
    """Compute the (bs*num_queries, num_targets) matching-cost matrix."""
    bs, nq, n_cls = pred_logits.shape
    M = bs * nq
    T = int(tgt_spans.shape[0])

    # Row tile: as large as sensible, but keep >= 2 row tiles when possible so
    # both v7x TensorCores get work via the "parallel" grid axis.
    TM = min(512, max(8, _round_up(pl.cdiv(M, 2), 8)))
    M_pad = _round_up(M, TM)
    # Target tile: lane-dense multiple of 128, capped so (TM, TN) f32 blocks
    # double-buffered stay far below every chip's scoped-VMEM budget.
    TN = min(512, _round_up(max(T, 1), 128))
    T_pad = _round_up(max(T, 1), TN)

    # --- tiny wrapper-side preprocessing (negligible, fuses in XLA) ----------
    # foreground softmax prob + (cx,w)->(st,ed); pack everything per query into
    # one 8-lane array so each grid step issues a single small input DMA.
    logits2d = pred_logits.reshape(M, n_cls).astype(jnp.float32)
    prob_fg = jax.nn.softmax(logits2d, axis=-1)[:, foreground_label:foreground_label + 1]

    spans2d = pred_spans.reshape(M, 2).astype(jnp.float32)
    o_cx, o_w = spans2d[:, 0:1], spans2d[:, 1:2]
    q_feat = jnp.concatenate(
        [o_cx, o_w, o_cx - 0.5 * o_w, o_cx + 0.5 * o_w, prob_fg,
         jnp.zeros((M, 3), jnp.float32)], axis=1)                # (M, 8)
    # padded (fake) queries/targets use harmless positive-width spans (no NaN)
    # and are sliced away from the result.
    q_pad = jnp.tile(jnp.asarray([[0.5, 0.5, 0.25, 0.75, 0.5, 0.0, 0.0, 0.0]],
                                 jnp.float32), (M_pad, 1))
    q_pad = q_pad.at[:M].set(q_feat)

    t = tgt_spans.astype(jnp.float32)
    t_cx, t_w = t[:, 0], t[:, 1]
    t_feat = jnp.stack([t_cx, t_w, t_cx - 0.5 * t_w, t_cx + 0.5 * t_w], axis=0)
    t_pad = jnp.tile(jnp.asarray([[0.5], [0.5], [0.25], [0.75],
                                  [0.0], [0.0], [0.0], [0.0]], jnp.float32),
                     (1, T_pad))
    t_pad = t_pad.at[:4, :T].set(t_feat)

    kernel = functools.partial(_cost_kernel,
                               w_class=float(cost_class),
                               w_span=float(cost_span),
                               w_giou=float(cost_giou))

    # Double-buffered (TM,TN)+(TM,8)+(8,TN) f32 blocks are < 3 MiB at the caps
    # above; 32 MiB keeps v5e (16 MiB default) pipelined and is the default on
    # v6e/v7x, well under v7x's 64 MiB physical VMEM.
    vmem_limit = 32 * 1024 * 1024

    cost = pl.pallas_call(
        kernel,
        out_shape=jax.ShapeDtypeStruct((M_pad, T_pad), jnp.float32),
        grid=(M_pad // TM, T_pad // TN),
        in_specs=[
            pl.BlockSpec((TM, 8), lambda i, j: (i, 0)),
            pl.BlockSpec((8, TN), lambda i, j: (0, j)),
        ],
        out_specs=pl.BlockSpec((TM, TN), lambda i, j: (i, j)),
        compiler_params=pltpu.CompilerParams(
            dimension_semantics=("parallel", "parallel"),
            vmem_limit_bytes=vmem_limit),
    )(q_pad, t_pad)

    return cost[:M, :T]


# --------------------------- matcher forward --------------------------------


def hungarian_matcher_forward(outputs, targets,
                              cost_class=1.0, cost_span=1.0, cost_giou=1.0):
    """Mirrors HungarianMatcher.forward (span_loss_type='l1', no grad)."""
    pred_logits = outputs["pred_logits"]          # (bs, nq, n_cls)
    pred_spans = outputs["pred_spans"]            # (bs, nq, 2) in (cx, w)
    span_list = [t["spans"] for t in targets["span_labels"]]
    sizes = [int(s.shape[0]) for s in span_list]
    tgt_spans = jnp.concatenate(span_list, axis=0)

    bs, nq = pred_spans.shape[:2]
    C = pallas_matching_cost(pred_logits, pred_spans, tgt_spans,
                             cost_class, cost_span, cost_giou)
    C_host = np.asarray(jax.device_get(C)).reshape(bs, nq, -1)

    # TODO(synk): linear_sum_assignment (Hungarian algorithm) is sequential
    # combinatorial host code; the reference PyTorch module also runs it on
    # CPU (C.cpu()), so it stays outside the Pallas kernel.
    indices = []
    off = 0
    for b, sz in enumerate(sizes):
        i, j = linear_sum_assignment(C_host[b, :, off:off + sz])
        indices.append((np.asarray(i, np.int64), np.asarray(j, np.int64)))
        off += sz
    return indices


# ------------------------------ jnp reference --------------------------------


def _ref_cost(pred_logits, pred_spans, tgt_spans,
              cost_class=1.0, cost_span=1.0, cost_giou=1.0):
    n_cls = pred_logits.shape[-1]
    out_prob = jax.nn.softmax(pred_logits.reshape(-1, n_cls), axis=-1)
    c_class = -out_prob[:, 0:1]                               # tgt_ids all = 0

    out_spans = pred_spans.reshape(-1, 2)
    c_span = jnp.sum(jnp.abs(out_spans[:, None, :] - tgt_spans[None, :, :]),
                     axis=-1)

    def cxw_to_xx(s):
        return jnp.stack([s[..., 0] - 0.5 * s[..., 1],
                          s[..., 0] + 0.5 * s[..., 1]], axis=-1)

    o = cxw_to_xx(out_spans)
    t = cxw_to_xx(tgt_spans)
    areas1 = o[:, 1] - o[:, 0]
    areas2 = t[:, 1] - t[:, 0]
    inter = jnp.clip(jnp.minimum(o[:, None, 1], t[None, :, 1])
                     - jnp.maximum(o[:, None, 0], t[None, :, 0]), 0.0)
    union = areas1[:, None] + areas2[None, :] - inter
    iou = inter / union
    enc = jnp.clip(jnp.maximum(o[:, None, 1], t[None, :, 1])
                   - jnp.minimum(o[:, None, 0], t[None, :, 0]), 0.0)
    giou = iou - (enc - union) / enc
    return cost_span * c_span + cost_giou * (-giou) + cost_class * c_class


def _ref_indices(C_ref, bs, nq, sizes):
    C_host = np.asarray(jax.device_get(C_ref)).reshape(bs, nq, -1)
    out, off = [], 0
    for b, sz in enumerate(sizes):
        i, j = linear_sum_assignment(C_host[b, :, off:off + sz])
        out.append((np.asarray(i, np.int64), np.asarray(j, np.int64)))
        off += sz
    return out


# ---------------------------------- main -------------------------------------


if __name__ == "__main__":
    bs, nq, n_cls = 2, 10, 2          # batch, num_queries, num_classes
    sizes = [3, 5]                    # target spans per batch element

    root = jax.random.PRNGKey(0)
    k_log, k_pcx, k_pw, k_tcx, k_tw = jax.random.split(root, 5)

    pred_logits = jax.random.normal(k_log, (bs, nq, n_cls), jnp.float32)
    pred_cx = jax.random.uniform(k_pcx, (bs, nq), jnp.float32, 0.2, 0.8)
    pred_w = jax.random.uniform(k_pw, (bs, nq), jnp.float32, 0.05, 0.4)
    pred_spans = jnp.stack([pred_cx, pred_w], axis=-1)        # (bs, nq, 2)

    total_t = sum(sizes)
    tgt_cx = jax.random.uniform(k_tcx, (total_t,), jnp.float32, 0.2, 0.8)
    tgt_w = jax.random.uniform(k_tw, (total_t,), jnp.float32, 0.05, 0.4)
    tgt_all = jnp.stack([tgt_cx, tgt_w], axis=-1)             # (total_t, 2)

    span_list, off = [], 0
    for sz in sizes:
        span_list.append(tgt_all[off:off + sz])
        off += sz

    outputs = {"pred_logits": pred_logits, "pred_spans": pred_spans}
    targets = {"span_labels": [{"spans": s} for s in span_list]}

    # --- Pallas cost matrix + host assignment --------------------------------
    C = pallas_matching_cost(pred_logits, pred_spans, tgt_all)
    C = jax.block_until_ready(C)
    indices = hungarian_matcher_forward(outputs, targets)

    # --- verify against pure-jnp reference -----------------------------------
    C_ref = _ref_cost(pred_logits, pred_spans, tgt_all)
    assert C.shape == (bs * nq, total_t)
    assert jnp.allclose(C, C_ref, atol=5e-3, rtol=5e-3), \
        "cost matrix mismatch vs jnp reference"

    ref_idx = _ref_indices(C_ref, bs, nq, sizes)
    C_ref_host = np.asarray(jax.device_get(C_ref)).reshape(bs, nq, -1)
    assert len(indices) == bs
    off = 0
    for b, ((pi, pj), (ri, rj), sz) in enumerate(zip(indices, ref_idx, sizes)):
        assert len(pi) == len(pj) == min(nq, sz)
        if not (np.array_equal(pi, ri) and np.array_equal(pj, rj)):
            # approx-reciprocal noise may pick a different but equal-cost
            # assignment; accept if totals under the reference cost agree.
            blk = C_ref_host[b, :, off:off + sz]
            d = abs(float(blk[pi, pj].sum()) - float(blk[ri, rj].sum()))
            assert d < 1e-2, "assignment mismatch vs reference"
        off += sz

    print("KERNEL_OK")
</pallas_src>

<mosaic_0001>
module attributes {stable_mosaic.version = 11 : i64} {
  func.func @_cost_kernel(%arg0: i32, %arg1: i32, %arg2: memref<16x8xf32, #tpu.memory_space<vmem>>, %arg3: memref<8x128xf32, #tpu.memory_space<vmem>>, %arg4: memref<16x128xf32, #tpu.memory_space<vmem>>) attributes {dimension_semantics = [#tpu.dimension_semantics<parallel>, #tpu.dimension_semantics<parallel>], iteration_bounds = array<i64: 2, 1>, scalar_prefetch = 0 : i64, scratch_operands = 0 : i64, tpu.core_type = #tpu.core_type<tc>, window_params = [{transform_indices = @transform_0, window_bounds = array<i64: 16, 8>}, {transform_indices = @transform_1, window_bounds = array<i64: 8, 128>}, {transform_indices = @transform_2, window_bounds = array<i64: 16, 128>}]} {
    %c0 = arith.constant 0 : index
    %c0_0 = arith.constant 0 : index
    %0 = vector.load %arg2[%c0, %c0_0] : memref<16x8xf32, #tpu.memory_space<vmem>>, vector<16x8xf32>
    %1 = vector.extract_strided_slice %0 {offsets = [0, 0], sizes = [16, 1], strides = [1, 1]} : vector<16x8xf32> to vector<16x1xf32>
    %2 = vector.extract_strided_slice %0 {offsets = [0, 1], sizes = [16, 1], strides = [1, 1]} : vector<16x8xf32> to vector<16x1xf32>
    %3 = vector.extract_strided_slice %0 {offsets = [0, 2], sizes = [16, 1], strides = [1, 1]} : vector<16x8xf32> to vector<16x1xf32>
    %4 = vector.extract_strided_slice %0 {offsets = [0, 3], sizes = [16, 1], strides = [1, 1]} : vector<16x8xf32> to vector<16x1xf32>
    %5 = vector.extract_strided_slice %0 {offsets = [0, 4], sizes = [16, 1], strides = [1, 1]} : vector<16x8xf32> to vector<16x1xf32>
    %c0_1 = arith.constant 0 : index
    %c0_2 = arith.constant 0 : index
    %6 = vector.load %arg3[%c0_1, %c0_2] : memref<8x128xf32, #tpu.memory_space<vmem>>, vector<1x128xf32>
    %c1 = arith.constant 1 : index
    %c0_3 = arith.constant 0 : index
    %7 = vector.load %arg3[%c1, %c0_3] : memref<8x128xf32, #tpu.memory_space<vmem>>, vector<1x128xf32>
    %c2 = arith.constant 2 : index
    %c0_4 = arith.constant 0 : index
    %8 = vector.load %arg3[%c2, %c0_4] : memref<8x128xf32, #tpu.memory_space<vmem>>, vector<1x128xf32>
    %c3 = arith.constant 3 : index
    %c0_5 = arith.constant 0 : index
    %9 = vector.load %arg3[%c3, %c0_5] : memref<8x128xf32, #tpu.memory_space<vmem>>, vector<1x128xf32>
    %10 = vector.broadcast %1 : vector<16x1xf32> to vector<16x128xf32>
    %11 = vector.broadcast %6 : vector<1x128xf32> to vector<16x128xf32>
    %12 = arith.subf %10, %11 : vector<16x128xf32>
    %13 = math.absf %12 : vector<16x128xf32>
    %14 = vector.broadcast %2 : vector<16x1xf32> to vector<16x128xf32>
    %15 = vector.broadcast %7 : vector<1x128xf32> to vector<16x128xf32>
    %16 = arith.subf %14, %15 : vector<16x128xf32>
    %17 = math.absf %16 : vector<16x128xf32>
    %18 = arith.addf %13, %17 : vector<16x128xf32>
    %19 = vector.broadcast %4 : vector<16x1xf32> to vector<16x128xf32>
    %20 = vector.broadcast %9 : vector<1x128xf32> to vector<16x128xf32>
    %21 = arith.minimumf %19, %20 : vector<16x128xf32>
    %22 = vector.broadcast %3 : vector<16x1xf32> to vector<16x128xf32>
    %23 = vector.broadcast %8 : vector<1x128xf32> to vector<16x128xf32>
    %24 = arith.maximumf %22, %23 : vector<16x128xf32>
    %25 = arith.subf %21, %24 : vector<16x128xf32>
    %cst = arith.constant 0.000000e+00 : f32
    %26 = vector.broadcast %cst : f32 to vector<16x128xf32>
    %27 = arith.maximumf %25, %26 : vector<16x128xf32>
    %28 = vector.broadcast %2 : vector<16x1xf32> to vector<16x128xf32>
    %29 = vector.broadcast %7 : vector<1x128xf32> to vector<16x128xf32>
    %30 = arith.addf %28, %29 : vector<16x128xf32>
    %31 = arith.subf %30, %27 : vector<16x128xf32>
    %32 = vector.broadcast %4 : vector<16x1xf32> to vector<16x128xf32>
    %33 = vector.broadcast %9 : vector<1x128xf32> to vector<16x128xf32>
    %34 = arith.subf %32, %33 : vector<16x128xf32>
    %35 = math.absf %34 : vector<16x128xf32>
    %36 = arith.addf %25, %35 : vector<16x128xf32>
    %37 = vector.broadcast %3 : vector<16x1xf32> to vector<16x128xf32>
    %38 = vector.broadcast %8 : vector<1x128xf32> to vector<16x128xf32>
    %39 = arith.subf %37, %38 : vector<16x128xf32>
    %40 = math.absf %39 : vector<16x128xf32>
    %41 = arith.addf %36, %40 : vector<16x128xf32>
    %42 = tpu.reciprocal %31 {approx = true} : vector<16x128xf32> -> vector<16x128xf32>
    %43 = tpu.reciprocal %41 {approx = true} : vector<16x128xf32> -> vector<16x128xf32>
    %44 = arith.mulf %27, %42 : vector<16x128xf32>
    %45 = arith.mulf %31, %43 : vector<16x128xf32>
    %46 = arith.addf %44, %45 : vector<16x128xf32>
    %cst_6 = arith.constant 1.000000e+00 : f32
    %47 = vector.broadcast %cst_6 : f32 to vector<16x128xf32>
    %48 = arith.subf %46, %47 : vector<16x128xf32>
    %cst_7 = arith.constant 1.000000e+00 : f32
    %49 = vector.broadcast %cst_7 : f32 to vector<16x128xf32>
    %50 = arith.mulf %49, %18 : vector<16x128xf32>
    %cst_8 = arith.constant 1.000000e+00 : f32
    %51 = vector.broadcast %cst_8 : f32 to vector<16x128xf32>
    %52 = arith.mulf %51, %48 : vector<16x128xf32>
    %53 = arith.subf %50, %52 : vector<16x128xf32>
    %cst_9 = arith.constant 1.000000e+00 : f32
    %54 = vector.broadcast %cst_9 : f32 to vector<16x1xf32>
    %55 = arith.mulf %54, %5 : vector<16x1xf32>
    %56 = vector.broadcast %55 : vector<16x1xf32> to vector<16x128xf32>
    %57 = arith.subf %53, %56 : vector<16x128xf32>
    %c0_10 = arith.constant 0 : index
    %c0_11 = arith.constant 0 : index
    %58 = vector.load %arg4[%c0_10, %c0_11] : memref<16x128xf32, #tpu.memory_space<vmem>>, vector<16x128xf32>
    tpu.vector_store %arg4[%c0_10, %c0_11], %57 {strides = array<i32>} : memref<16x128xf32, #tpu.memory_space<vmem>>, vector<16x128xf32>,
    return
  }
  func.func @transform_0(%arg0: i32, %arg1: i32) -> (i32, i32) {
    %c0_i32 = arith.constant 0 : i32
    %c0_i32_0 = arith.constant 0 : i32
    return %arg0, %c0_i32 : i32, i32
  }
  func.func @transform_1(%arg0: i32, %arg1: i32) -> (i32, i32) {
    %c0_i32 = arith.constant 0 : i32
    %c0_i32_0 = arith.constant 0 : i32
    return %c0_i32, %arg1 : i32, i32
  }
  func.func @transform_2(%arg0: i32, %arg1: i32) -> (i32, i32) {
    %c0_i32 = arith.constant 0 : i32
    return %arg0, %arg1 : i32, i32
  }
}

</mosaic_0001>

<bundles_post_ra>
// kernel: tpu_custom_call.1
= control target key start
LH: loop header
LB: loop body
LE: loop exit
PB: predicated region body
PF: predicated region fallthrough
CT: control target
= control target key end

     0   :  { %7 = vsyncpa [#allocation3], 0  ;;  %s723_s0 = inlined_call_operand.vmem [shape: f32[32,8], index: 0, kind: input, shape index: {}]   ;;  %s724_s1 = inlined_call_operand.vmem [shape: f32[8,128], index: 1, kind: input, shape index: {}]   ;;  %s725_s2 = inlined_call_operand.hbm [shape: f32[32,128], index: 2, kind: output, shape index: {}]  }
   0x1   :  { %9 = vsyncpa [#allocation3 + $0x1], 0  ;;  %s594_s9 = smov 0   ;;  %s596_s10 = smov 0  }
   0x2   :  { %s598_s11 = smov 0   ;;  %s600_s12 = smov 0  }
   0x3   :  { %s602_s13 = smov 0   ;;  %s604_s14 = smov 0  }
   0x4 LB: > { %s394_s15 = sadd.s32 4294967295, %s569_s14   ;;  %s395_s16 = sadd.s32 4294967294, %s569_s14   ;;  %s569_s14 = sphi %s604_s14, %s15_s14   ;;  %s565_s13 = sphi %s602_s13, %s732_s13   ;;  %s561_s12 = sphi %s600_s12, %s731_s12   ;;  %s557_s11 = sphi %s598_s11, %s730_s11   ;;  %s553_s10 = sphi %s596_s10, %s729_s10   ;;  %s549_s9 = sphi %s594_s9, %s728_s9  }
   0x5   : > { %s27_s17 = sadd.s32 1, %s565_s13  ;;  %s88_s18 = sadd.s32 1, %s557_s11 }
   0x6   : > { %p29_p0 = scmp.ge.s32.totalorder %s27_s17, 2  ;;  %p98_p1 = scmp.ne.s32.totalorder %s557_s11, %s553_s10 }
   0x7   : > { %p99_p2 = scmp.eq.s32.totalorder %s394_s15, 1  ;;  %p104_p3 = scmp.ne.s32.totalorder %s553_s10, %s549_s9 }
   0x8   : > { %s734_s17 = smov (%p29_p0, %s27_s17), 0  ;;  %p105_p5 = scmp.eq.s32.totalorder %s395_s16, 1 }
   0x9   : > { %p634_p4 = por %p99_p2, %p98_p1  ;;  %s83_s20 = ssub.s32 %s565_s13, %s734_s17 }
   0xa   : > { %p399_p6 = scmp.ge.s32.totalorder %s569_s14, 1  ;;  %p86_p7 = scmp.eq.s32.totalorder %s83_s20, 0 }
   0xb   : > { %p641_p8 = por %p105_p5, %p104_p3  ;;  %p139_p9 = scmp.lt.s32.totalorder %s569_s14, 3 }
   0xc   : > { %s647_s22 = scalar_select %p86_p7, %s557_s11, %s88_s18  }
   0xd   : > { %p140_p10 = pnand %p399_p6, %p139_p9 }
   0xe   : > { %s401_s23 = sshll.u32 (!%p140_p10), %s561_s12, 1  ;;  %s162_s8 = sand.u32 (!%p140_p10), 1, %s553_s10  }
   0xf   : > { %143 = sbr.rel (%p140_p10) target bundleno = 201 (0xc9), region = 28  ;;  %p166_p11 = scmp.lt.s32.totalorder (!%p140_p10), %s401_s23, 3 }
  0x10   : > { %s400_s15 = sshll.u32 (!%p140_p10), %s162_s8, 4  ;;  %s414_s20 = sshll.u32 (!%p140_p10), %s561_s12, 8 }
  0x11   : > { %s164_s16 = scalar_lea.vmem (!%p140_p10), [#allocation2], %s400_s15  ;;  %s674_s25 = scalar_lea.hbm (!%p140_p10), %s725_s2, %s414_s20 }
  0x12   : > { %s307_s18 = sshll.u32 (!%p140_p10), %s164_s16, 4  ;;  %s678_s26 = scalar_lea.sflag (!%p140_p10), [#allocation3], %s162_s8  ;;  %s669_s18 = int_to_ptr.vmem [resolvable:$true] %s307_s18 }
  0x13   : > { %s493_s12 = scalar_lea.vmem (!%p140_p10), %s669_s18, 256 }
  0x14   : > { %v571_v0 = vmov 2   ;;  %v572_v1 = vmov 3   ;;  %s736_s23 = smov (!%p166_p11, %s401_s23), 3  ;;  %v573_v4 = vmov 1   ;;  %v574_v5 = vmov 0   ;;  %p494_p12 = scmp.ne.s32.totalorder %s669_s18, %s493_s12 }
  0x15   : > { %478 = vset.pattern.permute.xlu1 %v571_v0  ;;  %477 = vset.pattern.permute.xlu0 %v572_v1  ;;  %s402_s24 = sshll.u32 %s736_s23, 3  ;;  %v575_v6 = vmov 4   ;;  %v406_v7 = vld [vmem:[%s724_s1 + $0x2] ss:$0 sm:$0xff]  ;;  %v405_v8 = vld [vmem:[%s724_s1 + $0x3] ss:$0 sm:$0xff] }
  0x16   : > { %s169_s27 = scalar_lea.vmem %s723_s0, %s402_s24  ;;  %v404_v26 = vld [vmem:[%s724_s1 + $0x1] ss:$0 sm:$0xff]  ;;  %v403_v40 = vld [vmem:[%s724_s1] ss:$0 sm:$0xff]  ;;  %p495_p13 = pnand %p494_p12, %p634_p4 }
  0x17   : > { %v176_v2 = vld [vmem:[%s169_s27] sm:$0xff]  ;;  %v177_v3 = vld [vmem:[%s169_s27 + $0x8] sm:$0xff]  ;;  %s576_s27 = smov [#allocation2]  }
  0x18   : > { %233 = vperm.xlu1 %478, %v176_v2   ;;  %219 = vperm.xlu0 %477, %v176_v2   ;;  %p496_p0 = pneg %p495_p13  ;;  %s497_s28 = sshll.u32 %s576_s27, 4  ;;  %s498_s28 = int_to_ptr.vmem [resolvable:$false] %s497_s28 }
  0x19   : > { %s499_s29 = scalar_lea.vmem %s498_s28, 512  ;;  %p500_p1 = scmp.lt.s32.totalorder %s669_s18, %s498_s28 }
  0x1a   : > { %p501_p2 = scmp.lt.s32.totalorder %s499_s29, %s493_s12 }
  0x1c   : > { %237 = vperm.xlu1 %478, %v177_v3   ;;  %223 = vperm.xlu0 %477, %v177_v3   ;;  %p502_p3 = por %p501_p2, %p500_p1 }
  0x1e   : > { %p503_p5 = pnand %p502_p3, %p496_p0 }
  0x20   : > { %480 = vset.pattern.permute.xlu1 %v573_v4  ;;  %479 = vset.pattern.permute.xlu0 %v573_v4 }
  0x21   : > { %205 = vperm.xlu1 %480, %v177_v3   ;;  %201 = vperm.xlu0 %479, %v176_v2  }
  0x25   : > { %481 = vset.pattern.permute.xlu1 %v574_v5  ;;  %482 = vset.pattern.permute.xlu0 %v574_v5 }
  0x26   : > { %184 = vperm.xlu1 %481, %v176_v2   ;;  %189 = vperm.xlu0 %482, %v177_v3  }
  0x2a   : > { %483 = vset.pattern.permute.xlu1 %v575_v6  ;;  %484 = vset.pattern.permute.xlu0 %v575_v6 }
  0x2b   : > { %281 = vperm.xlu1 %483, %v176_v2  }
  0x2f   : > { %285 = vperm.xlu1 %483, %v177_v3  }
  0x93   : > { %v234_v9 = vpop.permute.xlu1 %233  ;;  %v220_v10 = vpop.permute.xlu0 %219 }
  0x94   : > { %v244_v11 = vmax.f32 %v234_v9, %v406_v7  ;;  %v230_v12 = vmin.f32 %v220_v10, %v405_v8  ;;  %v254_v13 = vsub.f32 %v220_v10, %v405_v8  ;;  %v260_v14 = vsub.f32 %v234_v9, %v406_v7 }
  0x96   : > { %v246_v15 = vsub.f32 %v230_v12, %v244_v11  ;;  %v256_v16 = vand.u32 2147483647, %v254_v13  ;;  %v262_v24 = vand.u32 2147483647, %v260_v14 }
  0x97   : > { %v238_v17 = vpop.permute.xlu1 %237  ;;  %v224_v18 = vpop.permute.xlu0 %223 }
  0x98   : > { %v258_v19 = vadd.f32 %v256_v16, %v246_v15  ;;  %v245_v20 = vmax.f32 %v238_v17, %v406_v7  ;;  %v231_v21 = vmin.f32 %v224_v18, %v405_v8  ;;  %v261_v22 = vsub.f32 %v238_v17, %v406_v7 }
  0x99   : > { %v255_v23 = vsub.f32 %v224_v18, %v405_v8  ;;  %v248_v35 = vmax.f32 %v246_v15, 0.0 }
  0x9a   : > { %v247_v25 = vsub.f32 %v231_v21, %v245_v20  ;;  %v264_v28 = vadd.f32 %v262_v24, %v258_v19  ;;  %v263_v32 = vand.u32 2147483647, %v261_v22 }
  0x9b   : > { %v257_v27 = vand.u32 2147483647, %v255_v23 }
  0x9c   : > { %v206_v29 = vpop.permute.xlu1 %205  ;;  %v249_v30 = vmax.f32 %v247_v25, 0.0  ;;  %v202_v31 = vpop.permute.xlu0 %201  ;;  %485 = vrcp.f32 %v264_v28 }
  0x9d   : > { %v259_v33 = vadd.f32 %v257_v27, %v247_v25  ;;  %v251_v34 = vadd.f32 %v404_v26, %v206_v29  ;;  %v250_v36 = vadd.f32 %v404_v26, %v202_v31  ;;  %v213_v47 = vsub.f32 %v206_v29, %v404_v26 }
  0x9e   : > { %v212_v50 = vsub.f32 %v202_v31, %v404_v26 }
  0x9f   : > { %v265_v37 = vadd.f32 %v263_v32, %v259_v33  ;;  %v253_v38 = vsub.f32 %v251_v34, %v249_v30  ;;  %v252_v39 = vsub.f32 %v250_v36, %v248_v35  ;;  %v215_v58 = vand.u32 2147483647, %v213_v47 }
  0xa0   : > { %v214_v60 = vand.u32 2147483647, %v212_v50 }
  0xa1   : > { %487 = vrcp.f32 %v265_v37  ;;  %v190_v41 = vpop.permute.xlu0 %189  ;;  %v185_v42 = vpop.permute.xlu1 %184 }
  0xa2   : > { %489 = vrcp.f32 %v253_v38  ;;  %v197_v43 = vsub.f32 %v190_v41, %v403_v40  ;;  %v196_v45 = vsub.f32 %v185_v42, %v403_v40 }
  0xa3   : > { %491 = vrcp.f32 %v252_v39 }
  0xa4   : > { %v199_v52 = vand.u32 2147483647, %v197_v43  ;;  %v198_v55 = vand.u32 2147483647, %v196_v45 }
  0xa6   : > { %v282_v56 = vpop.permute.xlu1 %281  ;;  %v217_v62 = vadd.f32 %v215_v58, %v199_v52  ;;  %v216_v0 = vadd.f32 %v214_v60, %v198_v55 }
  0xa9   : > { %v486_v44 = vpop.eup %485 }
  0xaa   : > { %v272_v54 = vmul.f32 %v486_v44, %v252_v39  ;;  %v286_v4 = vpop.permute.xlu1 %285 }
  0xae   : > { %v488_v46 = vpop.eup %487 }
  0xaf   : > { %v490_v48 = vpop.eup %489  ;;  %v273_v49 = vmul.f32 %v488_v46, %v253_v38 }
  0xb0   : > { %v492_v51 = vpop.eup %491  ;;  %v271_v53 = vmul.f32 %v490_v48, %v249_v30 }
  0xb1   : > { %v270_v57 = vmul.f32 %v492_v51, %v248_v35 }
  0xb2   : > { %v275_v59 = vadd.f32 %v273_v49, %v271_v53 }
  0xb3   : > { %v274_v61 = vadd.f32 %v272_v54, %v270_v57 }
  0xb4   : > { %v408_v63 = vadd.f32 -1.0, %v275_v59 }
  0xb5   : > { %v407_v1 = vadd.f32 -1.0, %v274_v61 }
  0xb6   : > { %v279_v2 = vsub.f32 %v217_v62, %v408_v63 }
  0xb7   : > { %v278_v3 = vsub.f32 %v216_v0, %v407_v1 }
  0xb8   : > { %v289_v5 = vsub.f32 %v279_v2, %v286_v4 }
  0xb9   : > { %v288_v6 = vsub.f32 %v278_v3, %v282_v56 }
  0xba   : > { %291 = vst [vmem:[%s164_s16 + $0x8] sm:$0xff] %v289_v5 }
  0xbb   : > { %290 = vst [vmem:[%s164_s16] sm:$0xff] %v288_v6 }
  0xbc   : > { %506 = shalt.err (!%p503_p5)
}
  0xbd   : > { %s507_s30 = scalar_lea.hbm %s674_s25, 256  ;;  %s511_s5 = scalar_lea.hbm %s725_s2, 512 }
  0xbe   : > { %p508_p6 = scmp.ne.s32.totalorder %s674_s25, %s507_s30  ;;  %p512_p10 = scmp.lt.s32.totalorder %s674_s25, %s725_s2 }
  0xbf   : > { %p513_p11 = scmp.lt.s32.totalorder %s511_s5, %s507_s30 }
  0xc0   : > { %p509_p7 = pnand %p508_p6, %p634_p4 }
  0xc1   : > { %p514_p12 = por %p513_p11, %p512_p10 }
  0xc2   : > { %p510_p9 = pneg %p509_p7 }
  0xc4   : > { %p515_p13 = pnand %p514_p12, %p510_p9 }
  0xc6   : > { %518 = shalt.err (!%p515_p13)
}
  0xc7   : > { %s577_s8 = smov 128   ;;  %s578_s15 = smov 8  }
  0xc8   : > { %415 = dma.vmem_to_hbm [thread:$0]  (%p634_p4), %s669_s18, 256, %s674_s25, %s678_s26, %s577_s8, %s577_s8, %s578_s15  }
  0xc9 PF: > { %p421_p0 = scmp.ge.s32.totalorder %s569_s14, 2  ;;  %s322_s16 = sand.u32 1, %s549_s9  }
  0xca   : > { %s323_s20 = scalar_lea.sflag [#allocation3], %s322_s16 }
  0xcb   : > { %p418_p1 = pnand %p421_p0, %p641_p8 }
  0xcd   : > { %p419_p2 = pneg %p418_p1 }
  0xcf   : > { %544 = dma.done.wait (%p419_p2), %s323_s20, 256  }
  0xd0   : > { %546 = vsyncadd (%p419_p2), %s323_s20, 4294967040  ;;  %s15_s14 = sadd.s32 1, %s569_s14   ;;  %s728_s9 = smov %s553_s10 }
  0xd1   : > { %p12_p3 = scmp.ge.s32.totalorder %s15_s14, 4   ;;  %s729_s10 = smov %s557_s11 }
  0xd2   : > { %s730_s11 = smov %s647_s22  ;;  %s731_s12 = smov %s565_s13 }
  0xd3   : > { %s732_s13 = smov %s734_s17  ;;  %14 = sbr.rel (!%p12_p3) target bundleno = 4 (0x4), region = 66 }
  0xd8   :  { %328 = vsyncpa [#allocation3], 1 }
  0xd9   :  { %330 = vsyncpa [#allocation3 + $0x1], 1 }

</bundles_post_ra>
